<compile_context>
chip_gen: v5e
topology: v5e:2x2
jax: 0.10.0
libtpu: 0.0.40
codegen_flags: <defaults>
</compile_context>

<pallas_src>
import functools

import jax
import jax.numpy as jnp
from jax import lax
from jax.experimental import pallas as pl
from jax.experimental.pallas import tpu as pltpu

LANES = 128
SUBLANES = 8
MAX_BLOCK_ROWS = 8192   # (8192, 128) f32 = 4 MiB/block; 2 inputs x 2 buffers = 16 MiB
ROW_ALIGN = 32          # keeps (block_rows, 128) legal for f32 / bf16 / int8 tilings


def _round_up(a, b):
    return (a + b - 1) // b * b


def _focal_loss_kernel(x_ref, t_ref, o_ref, *, alpha, gamma, logits,
                       block_rows, need_mask, last_c, last_i, rem):
    c = pl.program_id(0)   # partial-sum axis ("parallel"; lets v7x use both TCs)
    i = pl.program_id(1)   # streaming/reduction axis ("arbitrary")

    @pl.when(i == 0)
    def _():
        o_ref[...] = jnp.zeros_like(o_ref)

    x = x_ref[...].astype(jnp.float32)
    t = t_ref[...].astype(jnp.float32)

    # alpha_t = alpha*t + (1-alpha)*(1-t)  ==  (1-alpha) + (2*alpha-1)*t
    alpha_t = (1.0 - float(alpha)) + (2.0 * float(alpha) - 1.0) * t

    if logits:
        # Numerically stable BCE-with-logits:
        #   bce = max(x, 0) - x*t + log1p(exp(-|x|))
        bce = jnp.maximum(x, 0.0) - x * t + jnp.log1p(jnp.exp(-jnp.abs(x)))
    else:
        # binary_cross_entropy on probabilities; torch clamps each log at -100.
        log_p = jnp.maximum(jnp.log(x), -100.0)
        log_1mp = jnp.maximum(jnp.log(1.0 - x), -100.0)
        bce = -(t * log_p + (1.0 - t) * log_1mp)

    # pt = exp(-bce): single EUP op (EUP slot has slack); exact for soft labels.
    pt = jnp.exp(-bce)
    one_m_pt = 1.0 - pt

    g = float(gamma)
    if g == int(g) and 0 <= int(g) <= 8:
        gi = int(g)
        if gi == 0:
            focal = jnp.ones_like(one_m_pt)
        else:
            focal = one_m_pt
            for _ in range(gi - 1):
                focal = focal * one_m_pt    # integer gamma -> pure multiplies
    else:
        focal = one_m_pt ** g

    f_loss = alpha_t * focal * bce

    def _accum(v):
        # VPU-only partial reduce onto the resident (8, 128) accumulator;
        # the final cross-lane/sublane reduce happens once in the wrapper.
        o_ref[...] += v.reshape(block_rows // SUBLANES, SUBLANES, LANES).sum(axis=0)

    if need_mask:
        # Only the globally-last block can contain lane padding or partial-block
        # garbage; all other grid steps take the cheaper unmasked path.
        is_last = jnp.logical_and(c == last_c, i == last_i)

        @pl.when(is_last)
        def _():
            rows = lax.broadcasted_iota(jnp.int32, (block_rows, LANES), 0)
            cols = lax.broadcasted_iota(jnp.int32, (block_rows, LANES), 1)
            local = rows * LANES + cols          # block-local -> no int32 overflow
            _accum(jnp.where(local < rem, f_loss, 0.0))

        @pl.when(jnp.logical_not(is_last))
        def _():
            _accum(f_loss)
    else:
        _accum(f_loss)


def focal_loss(inputs, targets, *, alpha=0.75, gamma=2, logits=True, reduce=True,
               max_block_rows=MAX_BLOCK_ROWS):
    """Pallas TPU implementation of FocalLoss.forward."""
    assert inputs.shape == targets.shape
    n_valid = int(inputs.size)
    assert n_valid > 0

    # Stream native dtypes (bf16/int8/... fine); cast happens inside the kernel.
    x = inputs.reshape(-1)
    t = targets.reshape(-1)

    rows = pl.cdiv(n_valid, LANES)
    lane_pad = rows * LANES - n_valid            # < 128 elements
    if lane_pad:
        x = jnp.pad(x, (0, lane_pad))
        t = jnp.pad(t, (0, lane_pad))
    x2 = x.reshape(rows, LANES)
    t2 = t.reshape(rows, LANES)

    block_rows = min(max_block_rows, _round_up(rows, ROW_ALIGN))
    block_rows = _round_up(block_rows, ROW_ALIGN)
    n_blocks = pl.cdiv(rows, block_rows)

    # Two independent partial sums only when it costs nothing (even block split).
    num_partials = 2 if (n_blocks >= 2 and n_blocks % 2 == 0) else 1
    blocks_per_core = n_blocks // num_partials

    need_mask = (n_blocks * block_rows * LANES) != n_valid
    rem = n_valid - (n_blocks - 1) * block_rows * LANES   # valid elems in last block
    last_c = num_partials - 1
    last_i = blocks_per_core - 1

    kernel = functools.partial(
        _focal_loss_kernel,
        alpha=float(alpha), gamma=gamma, logits=bool(logits),
        block_rows=block_rows, need_mask=need_mask,
        last_c=last_c, last_i=last_i, rem=rem)

    partials = pl.pallas_call(
        kernel,
        out_shape=jax.ShapeDtypeStruct((num_partials * SUBLANES, LANES), jnp.float32),
        grid_spec=pltpu.PrefetchScalarGridSpec(
            num_scalar_prefetch=0,
            grid=(num_partials, blocks_per_core),
            in_specs=[
                pl.BlockSpec((block_rows, LANES),
                             lambda c, i: (c * blocks_per_core + i, 0)),
                pl.BlockSpec((block_rows, LANES),
                             lambda c, i: (c * blocks_per_core + i, 0)),
            ],
            out_specs=pl.BlockSpec((SUBLANES, LANES), lambda c, i: (c, 0)),
        ),
        compiler_params=pltpu.CompilerParams(
            dimension_semantics=("parallel", "arbitrary"),
            vmem_limit_bytes=32 * 1024 * 1024),
    )(x2, t2)

    total = jnp.sum(partials)
    if reduce:
        return total / jnp.float32(n_valid)
    return total


def _focal_loss_ref(inputs, targets, *, alpha=0.75, gamma=2, logits=True, reduce=True):
    x = inputs.astype(jnp.float32)
    t = targets.astype(jnp.float32)
    alpha_t = alpha * t + (1.0 - alpha) * (1.0 - t)
    if logits:
        bce = jnp.maximum(x, 0.0) - x * t + jnp.log1p(jnp.exp(-jnp.abs(x)))
    else:
        bce = -(t * jnp.maximum(jnp.log(x), -100.0)
                + (1.0 - t) * jnp.maximum(jnp.log(1.0 - x), -100.0))
    pt = jnp.exp(-bce)
    f_loss = alpha_t * (1.0 - pt) ** gamma * bce
    return jnp.mean(f_loss) if reduce else jnp.sum(f_loss)


if __name__ == "__main__":
    key = jax.random.PRNGKey(0)

    def check(inputs, targets, *, alpha=0.75, gamma=2, logits=True,
              max_block_rows=MAX_BLOCK_ROWS):
        got_mean = focal_loss(inputs, targets, alpha=alpha, gamma=gamma,
                              logits=logits, reduce=True,
                              max_block_rows=max_block_rows)
        got_sum = focal_loss(inputs, targets, alpha=alpha, gamma=gamma,
                             logits=logits, reduce=False,
                             max_block_rows=max_block_rows)
        got_mean, got_sum = jax.block_until_ready((got_mean, got_sum))
        ref_mean = _focal_loss_ref(inputs, targets, alpha=alpha, gamma=gamma,
                                   logits=logits, reduce=True)
        ref_sum = _focal_loss_ref(inputs, targets, alpha=alpha, gamma=gamma,
                                  logits=logits, reduce=False)
        assert jnp.allclose(got_mean, ref_mean, rtol=1e-5, atol=1e-6), (got_mean, ref_mean)
        assert jnp.allclose(got_sum, ref_sum, rtol=1e-5, atol=1e-3), (got_sum, ref_sum)

    # 1) Primary case: f32 logits, f32 binary targets, NCHW (2, 4, 16, 16).
    ka, kb = jax.random.split(jax.random.fold_in(key, 0))
    shp = (2, 4, 16, 16)
    x = jax.random.normal(ka, shp, dtype=jnp.float32)
    tgt = jax.random.bernoulli(kb, 0.3, shp).astype(jnp.float32)
    check(x, tgt, alpha=0.75, gamma=2, logits=True)

    # 2) Ragged shape -> small lane pad + partial-block tail mask.
    ka, kb = jax.random.split(jax.random.fold_in(key, 1))
    shp = (3, 5, 17, 19)
    x = jax.random.normal(ka, shp, dtype=jnp.float32)
    tgt = jax.random.bernoulli(kb, 0.3, shp).astype(jnp.float32)
    check(x, tgt, alpha=0.75, gamma=2, logits=True)

    # 3) Narrow dtypes streamed natively: bf16 logits + int8 targets (no wrapper cast).
    ka, kb = jax.random.split(jax.random.fold_in(key, 2))
    shp = (2, 8, 16, 16)
    x = jax.random.normal(ka, shp, dtype=jnp.float32).astype(jnp.bfloat16)
    tgt = jax.random.bernoulli(kb, 0.3, shp).astype(jnp.int8)
    check(x, tgt, alpha=0.75, gamma=2, logits=True)

    # 4) Soft labels + logits=False probability path.
    ka, kb = jax.random.split(jax.random.fold_in(key, 3))
    shp = (2, 4, 16, 16)
    p = jax.random.uniform(ka, shp, minval=0.02, maxval=0.98, dtype=jnp.float32)
    tgt = jax.random.uniform(kb, shp, dtype=jnp.float32)
    check(p, tgt, alpha=0.75, gamma=2, logits=False)

    # 5) Multi-block grid (small block override): exercises the 2-way "parallel"
    #    partial-sum split and the mask-only-on-last-block gating.
    ka, kb = jax.random.split(jax.random.fold_in(key, 4))
    shp = (4, 4, 31, 16)   # 7936 elems -> 62 rows -> 2 blocks of 32 rows
    x = jax.random.normal(ka, shp, dtype=jnp.float32)
    tgt = jax.random.bernoulli(kb, 0.3, shp).astype(jnp.float32)
    check(x, tgt, alpha=0.75, gamma=2, logits=True, max_block_rows=32)

    print("KERNEL_OK")
</pallas_src>

<mosaic_0001>
module attributes {stable_mosaic.version = 11 : i64} {
  func.func @_focal_loss_kernel(%arg0: i32, %arg1: i32, %arg2: memref<32x128xf32, #tpu.memory_space<vmem>>, %arg3: memref<32x128xf32, #tpu.memory_space<vmem>>, %arg4: memref<8x128xf32, #tpu.memory_space<vmem>>) attributes {dimension_semantics = [#tpu.dimension_semantics<parallel>, #tpu.dimension_semantics<arbitrary>], iteration_bounds = array<i64: 1, 1>, scalar_prefetch = 0 : i64, scratch_operands = 0 : i64, tpu.core_type = #tpu.core_type<tc>, window_params = [{transform_indices = @transform_0, window_bounds = array<i64: 32, 128>}, {transform_indices = @transform_1, window_bounds = array<i64: 32, 128>}, {transform_indices = @transform_2, window_bounds = array<i64: 8, 128>}]} {
    %c0_i32 = arith.constant 0 : i32
    %0 = arith.cmpi eq, %arg1, %c0_i32 : i32
    %1 = arith.extui %0 : i1 to i32
    %c0_i32_0 = arith.constant 0 : i32
    %2 = arith.cmpi ne, %1, %c0_i32_0 : i32
    scf.if %2 {
      %cst_13 = arith.constant 0.000000e+00 : f32
      %35 = vector.broadcast %cst_13 : f32 to vector<8x128xf32>
      %c0_14 = arith.constant 0 : index
      %c0_15 = arith.constant 0 : index
      %36 = vector.load %arg4[%c0_14, %c0_15] : memref<8x128xf32, #tpu.memory_space<vmem>>, vector<8x128xf32>
      tpu.vector_store %arg4[%c0_14, %c0_15], %35 {strides = array<i32>} : memref<8x128xf32, #tpu.memory_space<vmem>>, vector<8x128xf32>,
    } else {
    }
    %c0 = arith.constant 0 : index
    %c0_1 = arith.constant 0 : index
    %3 = vector.load %arg2[%c0, %c0_1] : memref<32x128xf32, #tpu.memory_space<vmem>>, vector<32x128xf32>
    %c0_2 = arith.constant 0 : index
    %c0_3 = arith.constant 0 : index
    %4 = vector.load %arg3[%c0_2, %c0_3] : memref<32x128xf32, #tpu.memory_space<vmem>>, vector<32x128xf32>
    %cst = arith.constant 5.000000e-01 : f32
    %5 = vector.broadcast %cst : f32 to vector<32x128xf32>
    %6 = arith.mulf %5, %4 : vector<32x128xf32>
    %cst_4 = arith.constant 2.500000e-01 : f32
    %7 = vector.broadcast %cst_4 : f32 to vector<32x128xf32>
    %8 = arith.addf %7, %6 : vector<32x128xf32>
    %cst_5 = arith.constant 0.000000e+00 : f32
    %9 = vector.broadcast %cst_5 : f32 to vector<32x128xf32>
    %10 = arith.maximumf %3, %9 : vector<32x128xf32>
    %11 = arith.mulf %3, %4 : vector<32x128xf32>
    %12 = arith.subf %10, %11 : vector<32x128xf32>
    %13 = math.absf %3 : vector<32x128xf32>
    %cst_6 = arith.constant 0.000000e+00 : f32
    %14 = vector.broadcast %cst_6 : f32 to vector<32x128xf32>
    %15 = arith.subf %14, %13 : vector<32x128xf32>
    %16 = math.exp %15 : vector<32x128xf32>
    %17 = math.log1p %16 : vector<32x128xf32>
    %18 = arith.addf %12, %17 : vector<32x128xf32>
    %cst_7 = arith.constant 0.000000e+00 : f32
    %19 = vector.broadcast %cst_7 : f32 to vector<32x128xf32>
    %20 = arith.subf %19, %18 : vector<32x128xf32>
    %21 = math.exp %20 : vector<32x128xf32>
    %cst_8 = arith.constant 1.000000e+00 : f32
    %22 = vector.broadcast %cst_8 : f32 to vector<32x128xf32>
    %23 = arith.subf %22, %21 : vector<32x128xf32>
    %24 = arith.mulf %23, %23 : vector<32x128xf32>
    %25 = arith.mulf %8, %24 : vector<32x128xf32>
    %26 = arith.mulf %25, %18 : vector<32x128xf32>
    %c0_i32_9 = arith.constant 0 : i32
    %27 = arith.cmpi eq, %arg0, %c0_i32_9 : i32
    %c0_i32_10 = arith.constant 0 : i32
    %28 = arith.cmpi eq, %arg1, %c0_i32_10 : i32
    %29 = arith.andi %27, %28 : i1
    %30 = arith.extui %29 : i1 to i32
    %c0_i32_11 = arith.constant 0 : i32
    %31 = arith.cmpi ne, %30, %c0_i32_11 : i32
    scf.if %31 {
      %35 = tpu.iota {dimensions = array<i32: 0>} : vector<32x128xi32>
      %36 = tpu.iota {dimensions = array<i32: 1>} : vector<32x128xi32>
      %c128_i32 = arith.constant 128 : i32
      %37 = vector.broadcast %c128_i32 : i32 to vector<32x128xi32>
      %38 = arith.muli %35, %37 : vector<32x128xi32>
      %39 = arith.addi %38, %36 : vector<32x128xi32>
      %c2048_i32 = arith.constant 2048 : i32
      %40 = vector.broadcast %c2048_i32 : i32 to vector<32x128xi32>
      %41 = arith.cmpi slt, %39, %40 : vector<32x128xi32>
      %cst_13 = arith.constant 0.000000e+00 : f32
      %42 = vector.broadcast %cst_13 : f32 to vector<32x128xf32>
      %43 = arith.select %41, %26, %42 : vector<32x128xi1>, vector<32x128xf32>
      %c0_14 = arith.constant 0 : index
      %c0_15 = arith.constant 0 : index
      %44 = vector.load %arg4[%c0_14, %c0_15] : memref<8x128xf32, #tpu.memory_space<vmem>>, vector<8x128xf32>
      %45 = vector.shape_cast %43 : vector<32x128xf32> to vector<4x8x128xf32>
      %cst_16 = arith.constant dense<0.000000e+00> : vector<8x128xf32>
      %46 = vector.multi_reduction <add>, %45, %cst_16 [0] : vector<4x8x128xf32> to vector<8x128xf32>
      %47 = arith.addf %44, %46 : vector<8x128xf32>
      %c0_17 = arith.constant 0 : index
      %c0_18 = arith.constant 0 : index
      %48 = vector.load %arg4[%c0_17, %c0_18] : memref<8x128xf32, #tpu.memory_space<vmem>>, vector<8x128xf32>
      tpu.vector_store %arg4[%c0_17, %c0_18], %47 {strides = array<i32>} : memref<8x128xf32, #tpu.memory_space<vmem>>, vector<8x128xf32>,
    } else {
    }
    %true = arith.constant true
    %32 = arith.xori %29, %true : i1
    %33 = arith.extui %32 : i1 to i32
    %c0_i32_12 = arith.constant 0 : i32
    %34 = arith.cmpi ne, %33, %c0_i32_12 : i32
    scf.if %34 {
      %c0_13 = arith.constant 0 : index
      %c0_14 = arith.constant 0 : index
      %35 = vector.load %arg4[%c0_13, %c0_14] : memref<8x128xf32, #tpu.memory_space<vmem>>, vector<8x128xf32>
      %36 = vector.shape_cast %26 : vector<32x128xf32> to vector<4x8x128xf32>
      %cst_15 = arith.constant dense<0.000000e+00> : vector<8x128xf32>
      %37 = vector.multi_reduction <add>, %36, %cst_15 [0] : vector<4x8x128xf32> to vector<8x128xf32>
      %38 = arith.addf %35, %37 : vector<8x128xf32>
      %c0_16 = arith.constant 0 : index
      %c0_17 = arith.constant 0 : index
      %39 = vector.load %arg4[%c0_16, %c0_17] : memref<8x128xf32, #tpu.memory_space<vmem>>, vector<8x128xf32>
      tpu.vector_store %arg4[%c0_16, %c0_17], %38 {strides = array<i32>} : memref<8x128xf32, #tpu.memory_space<vmem>>, vector<8x128xf32>,
    } else {
    }
    return
  }
  func.func @transform_0(%arg0: i32, %arg1: i32) -> (i32, i32) {
    %c1_i32 = arith.constant 1 : i32
    %0 = arith.muli %arg0, %c1_i32 : i32
    %1 = arith.addi %0, %arg1 : i32
    %c0_i32 = arith.constant 0 : i32
    %c0_i32_0 = arith.constant 0 : i32
    return %1, %c0_i32 : i32, i32
  }
  func.func @transform_1(%arg0: i32, %arg1: i32) -> (i32, i32) {
    %c1_i32 = arith.constant 1 : i32
    %0 = arith.muli %arg0, %c1_i32 : i32
    %1 = arith.addi %0, %arg1 : i32
    %c0_i32 = arith.constant 0 : i32
    %c0_i32_0 = arith.constant 0 : i32
    return %1, %c0_i32 : i32, i32
  }
  func.func @transform_2(%arg0: i32, %arg1: i32) -> (i32, i32) {
    %c0_i32 = arith.constant 0 : i32
    %c0_i32_0 = arith.constant 0 : i32
    return %arg0, %c0_i32 : i32, i32
  }
}

</mosaic_0001>

<bundles_post_ra>
// kernel: tpu_custom_call.1
= control target key start
LH: loop header
LB: loop body
LE: loop exit
PB: predicated region body
PF: predicated region fallthrough
CT: control target
= control target key end

     0   :  { %7 = vsyncpa [#allocation3], 0  ;;  %s423_s0 = inlined_call_operand.hbm [shape: f32[16,128], index: 0, kind: input, shape index: {}]   ;;  %s424_s1 = inlined_call_operand.hbm [shape: f32[16,128], index: 1, kind: input, shape index: {}]   ;;  %s425_s2 = inlined_call_operand.hbm [shape: f32[8,128], index: 2, kind: output, shape index: {}]  }
   0x1   :  { %8 = vsyncpa [#allocation6], 0 }
   0x2   :  { %9 = vsyncpa [#allocation4], 0 }
   0x3   :  { %18 = vsyncadd [#allocation3], 256  ;;  %s23_s11 = sshll.u32 %s423_s0, 4  ;;  %s356_s12 = smov [#allocation2]   ;;  %s24_s11 = int_to_ptr.hbm [resolvable:$true] %s23_s11 }
   0x4   :  { %s25_s13 = sshll.u32 %s356_s12, 4  ;;  %s357_s14 = smov 128   ;;  %s26_s13 = int_to_ptr.vmem [resolvable:$true] %s25_s13 }
   0x5   :  { %s358_s15 = smov 8  }
   0x6   :  { %31 = dma.hbm_to_vmem [thread:$0]  %s24_s11, 256, %s26_s13, [#allocation3], %s357_s14, %s357_s14, %s358_s15  }
   0x7   :  { %40 = vsyncadd [#allocation6], 256  ;;  %s45_s18 = sshll.u32 %s424_s1, 4  ;;  %s359_s19 = smov [#allocation5]   ;;  %s46_s18 = int_to_ptr.hbm [resolvable:$true] %s45_s18 }
   0x8   :  { %s47_s20 = sshll.u32 %s359_s19, 4  ;;  %s48_s20 = int_to_ptr.vmem [resolvable:$true] %s47_s20 }
   0x9   :  { %53 = dma.hbm_to_vmem [thread:$0]  %s46_s18, 256, %s48_s20, [#allocation6], %s357_s14, %s357_s14, %s358_s15  }
   0xa   :  { %350 = dma.done.wait [#allocation3], 512  }
   0xb   :  { %351 = vsyncadd [#allocation3], 4294966784 }
   0xc   :  { %352 = dma.done.wait [#allocation6], 512  }
   0xd   :  { %353 = vsyncadd [#allocation6], 4294966784  ;;  %v75_v0 = vld [vmem:[#allocation2] sm:$0xff]  ;;  %v76_v1 = vld [vmem:[#allocation2 + $0x8] sm:$0xff]  ;;  %s360_s0 = smov [#allocation7]   ;;  %s237_s23 = sshll.u32 %s425_s2, 4  ;;  %s238_s23 = int_to_ptr.hbm [resolvable:$true] %s237_s23 }
   0xe   :  { %v382_v2 = vld [vmem:[#allocation2 + $0x10] sm:$0xff]  ;;  %v384_v3 = vld [vmem:[#allocation2 + $0x18] sm:$0xff]  ;;  %v103_v4 = vand.u32 2147483647, %v75_v0  ;;  %v104_v5 = vand.u32 2147483647, %v76_v1 }
   0xf   :  { %v105_v6 = vand.u32 2147483647, %v382_v2  ;;  %v106_v7 = vand.u32 2147483647, %v384_v3  ;;  %v388_v18 = vld [vmem:[#allocation5] sm:$0xff]  ;;  %v390_v25 = vld [vmem:[#allocation5 + $0x8] sm:$0xff] }
  0x10   :  { %v107_v8 = vsub.f32 0.0, %v103_v4  ;;  %v108_v9 = vsub.f32 0.0, %v104_v5  ;;  %v91_v26 = vmax.f32 %v75_v0, 0.0  ;;  %v92_v27 = vmax.f32 %v76_v1, 0.0  ;;  %v392_v29 = vld [vmem:[#allocation5 + $0x10] sm:$0xff]  ;;  %v395_v33 = vld [vmem:[#allocation5 + $0x18] sm:$0xff] }
  0x11   :  { %v109_v10 = vsub.f32 0.0, %v105_v6  ;;  %v110_v11 = vsub.f32 0.0, %v106_v7  ;;  %v95_v30 = vmul.f32 %v388_v18, %v75_v0  ;;  %v96_v37 = vmul.f32 %v390_v25, %v76_v1  ;;  %s235_s1 = sshll.u32 %s360_s0, 4  ;;  %s236_s1 = int_to_ptr.vmem [resolvable:$true] %s235_s1 }
  0x12   :  { %v111_v12 = vmul.f32 1.442695, %v107_v8  ;;  %v113_v13 = vmul.f32 1.442695, %v108_v9  ;;  %v93_v41 = vmax.f32 %v382_v2, 0.0  ;;  %v97_v42 = vmul.f32 %v392_v29, %v382_v2 }
  0x13   :  { %v115_v14 = vmul.f32 1.442695, %v109_v10  ;;  %v117_v15 = vmul.f32 1.442695, %v110_v11  ;;  %v94_v44 = vmax.f32 %v384_v3, 0.0  ;;  %v98_v45 = vmul.f32 %v395_v33, %v384_v3 }
  0x14   :  { %254 = vpow2.f32 %v111_v12  ;;  %v99_v49 = vsub.f32 %v91_v26, %v95_v30  ;;  %v100_v54 = vsub.f32 %v92_v27, %v96_v37  ;;  %v101_v59 = vsub.f32 %v93_v41, %v97_v42 }
  0x15   :  { %256 = vpow2.f32 %v113_v13  ;;  %v192_v0 = vlaneseq  ;;  %v102_v2 = vsub.f32 %v94_v44, %v98_v45  ;;  %v85_v30 = vmul.f32 0.5, %v392_v29 }
  0x16   :  { %258 = vpow2.f32 %v115_v14 }
  0x17   :  { %260 = vpow2.f32 %v117_v15  ;;  %v193_v12 = vshrl.u32 %v192_v0, 7  ;;  %v198_v27 = vand.u32 127, %v192_v0 }
  0x19   :  { %v196_v26 = vadd.s32 24, %v193_v12 }
  0x1a   :  { %v255_v16 = vpop.eup %254 }
  0x1b   :  { %v257_v17 = vpop.eup %256  ;;  %v119_v19 = vadd.f32 1.0, %v255_v16  ;;  %v122_v20 = vmul.f32 -0.5, %v255_v16  ;;  %v125_v34 = vand.u32 2147483647, %v255_v16 }
  0x1c   :  { %v259_v21 = vpop.eup %258  ;;  %v128_v22 = vadd.f32 1.0, %v257_v17  ;;  %v131_v23 = vmul.f32 -0.5, %v257_v17  ;;  %v134_v38 = vand.u32 2147483647, %v257_v17 }
  0x1d   :  { %v261_v24 = vpop.eup %260  ;;  %262 = vlog2.f32 %v119_v19  ;;  %v137_v28 = vadd.f32 1.0, %v259_v21  ;;  %v123_v31 = vadd.f32 1.0, %v122_v20  ;;  %v140_v32 = vmul.f32 -0.5, %v259_v21 }
  0x1e   :  { %264 = vlog2.f32 %v128_v22  ;;  %v132_v35 = vadd.f32 1.0, %v131_v23  ;;  %v146_v36 = vadd.f32 1.0, %v261_v24  ;;  %v149_v40 = vmul.f32 -0.5, %v261_v24 }
  0x1f   :  { %266 = vlog2.f32 %v137_v28  ;;  %v141_v39 = vadd.f32 1.0, %v140_v32  ;;  %v143_v43 = vand.u32 2147483647, %v259_v21  ;;  %v124_v46 = vmul.f32 %v255_v16, %v123_v31 }
  0x20   :  { %268 = vlog2.f32 %v146_v36  ;;  %v150_v47 = vadd.f32 1.0, %v149_v40  ;;  %vm404_vm0 = vcmp.lt.f32.partialorder %v125_v34, 0.0004427343  ;;  %v133_v51 = vmul.f32 %v257_v17, %v132_v35 }
  0x21   :  { %v152_v52 = vand.u32 2147483647, %v261_v24  ;;  %vm408_vm1 = vcmp.lt.f32.partialorder %v134_v38, 0.0004427343  ;;  %v142_v57 = vmul.f32 %v259_v21, %v141_v39  ;;  %vm144_vm2 = vcmp.lt.f32.partialorder %v143_v43, 0.0004427343 }
  0x22   :  { %v151_v63 = vmul.f32 %v261_v24, %v150_v47  ;;  %v194_v20 = vadd.s32 8, %v193_v12  ;;  %v195_v22 = vadd.s32 16, %v193_v12  ;;  %v83_v23 = vmul.f32 0.5, %v388_v18 }
  0x23   :  { %v263_v48 = vpop.eup %262  ;;  %vm153_vm3 = vcmp.lt.f32.partialorder %v152_v52, 0.0004427343  ;;  %v84_v24 = vmul.f32 0.5, %v390_v25  ;;  %v199_v28 = vmul.u32 128, %v193_v12  ;;  %v86_v36 = vmul.f32 0.5, %v395_v33 }
  0x24   :  { %v265_v53 = vpop.eup %264  ;;  %v121_v55 = vmul.f32 0.6931472, %v263_v48  ;;  %v200_v31 = vmul.u32 128, %v194_v20  ;;  %v201_v34 = vmul.u32 128, %v195_v22  ;;  %v87_v37 = vadd.f32 0.25, %v83_v23 }
  0x25   :  { %v267_v58 = vpop.eup %266  ;;  %v130_v60 = vmul.f32 0.6931472, %v265_v53  ;;  %v88_v40 = vadd.f32 0.25, %v84_v24  ;;  %v202_v18 = vmul.u32 128, %v196_v26  ;;  %v203_v42 = vadd.s32 %v199_v28, %v198_v27 }
  0x26   :  { %v127_v61 = vsel %vm404_vm0, %v124_v46, %v121_v55  ;;  %v139_v62 = vmul.f32 0.6931472, %v267_v58  ;;  %v269_v1 = vpop.eup %268  ;;  %v89_v25 = vadd.f32 0.25, %v85_v30  ;;  %v204_v45 = vadd.s32 %v200_v31, %v198_v27 }
  0x27   :  { %v136_v3 = vsel %vm408_vm1, %v133_v51, %v130_v60  ;;  %v155_v4 = vadd.f32 %v127_v61, %v99_v49  ;;  %v148_v6 = vmul.f32 0.6931472, %v269_v1  ;;  %v205_v29 = vadd.s32 %v201_v34, %v198_v27 }
  0x28   :  { %v145_v5 = vsel %vm144_vm2, %v142_v57, %v139_v62  ;;  %v156_v7 = vadd.f32 %v136_v3, %v100_v54  ;;  %v90_v48 = vadd.f32 0.25, %v86_v36  ;;  %v206_v33 = vadd.s32 %v202_v18, %v198_v27 }
  0x29   :  { %v157_v8 = vadd.f32 %v145_v5, %v101_v59  ;;  %v159_v9 = vsub.f32 0.0, %v155_v4  ;;  %v154_v10 = vsel %vm153_vm3, %v151_v63, %v148_v6  ;;  %vm207_vm4 = vcmp.lt.s32.totalorder %v203_v42, 2048 }
  0x2a   :  { %v160_v11 = vsub.f32 0.0, %v156_v7  ;;  %v158_v13 = vadd.f32 %v154_v10, %v102_v2  ;;  %vm208_vm5 = vcmp.lt.s32.totalorder %v204_v45, 2048  ;;  %vm209_vm6 = vcmp.lt.s32.totalorder %v205_v29, 2048 }
  0x2b   :  { %v161_v14 = vsub.f32 0.0, %v157_v8  ;;  %v163_v15 = vmul.f32 1.442695, %v159_v9  ;;  %vm210_vm7 = vcmp.lt.s32.totalorder %v206_v33, 2048 }
  0x2c   :  { %v165_v16 = vmul.f32 1.442695, %v160_v11  ;;  %v162_v17 = vsub.f32 0.0, %v158_v13 }
  0x2d   :  { %270 = vpow2.f32 %v163_v15  ;;  %v167_v19 = vmul.f32 1.442695, %v161_v14 }
  0x2e   :  { %272 = vpow2.f32 %v165_v16  ;;  %v169_v21 = vmul.f32 1.442695, %v162_v17 }
  0x2f   :  { %274 = vpow2.f32 %v167_v19 }
  0x30   :  { %276 = vpow2.f32 %v169_v21 }
  0x33   :  { %v271_v32 = vpop.eup %270 }
  0x34   :  { %v273_v35 = vpop.eup %272  ;;  %v171_v38 = vsub.f32 1.0, %v271_v32 }
  0x35   :  { %v275_v39 = vpop.eup %274  ;;  %v172_v41 = vsub.f32 1.0, %v273_v35 }
  0x36   :  { %v173_v43 = vsub.f32 1.0, %v275_v39  ;;  %v175_v44 = vmul.f32 %v171_v38, %v171_v38  ;;  %v277_v46 = vpop.eup %276 }
  0x37   :  { %v176_v47 = vmul.f32 %v172_v41, %v172_v41  ;;  %v174_v49 = vsub.f32 1.0, %v277_v46 }
  0x38   :  { %v177_v50 = vmul.f32 %v173_v43, %v173_v43  ;;  %v179_v51 = vmul.f32 %v175_v44, %v87_v37 }
  0x39   :  { %v180_v52 = vmul.f32 %v176_v47, %v88_v40  ;;  %v178_v53 = vmul.f32 %v174_v49, %v174_v49 }
  0x3a   :  { %v181_v54 = vmul.f32 %v177_v50, %v89_v25  ;;  %v183_v55 = vmul.f32 %v179_v51, %v155_v4 }
  0x3b   :  { %v184_v56 = vmul.f32 %v180_v52, %v156_v7  ;;  %v182_v57 = vmul.f32 %v178_v53, %v90_v48 }
  0x3c   :  { %v185_v58 = vmul.f32 %v181_v54, %v157_v8  ;;  %v211_v59 = vsel %vm207_vm4, %v183_v55, 0.0 }
  0x3d   :  { %v212_v60 = vsel %vm208_vm5, %v184_v56, 0.0  ;;  %v186_v61 = vmul.f32 %v182_v57, %v158_v13 }
  0x3e   :  { %v213_v62 = vsel %vm209_vm6, %v185_v58, 0.0  ;;  %v216_v63 = vadd.f32 %v212_v60, %v211_v59 }
  0x3f   :  { %v214_v0 = vsel %vm210_vm7, %v186_v61, 0.0 }
  0x40   :  { %v217_v1 = vadd.f32 %v216_v63, %v213_v62 }
  0x42   :  { %v218_v2 = vadd.f32 %v217_v1, %v214_v0 }
  0x44   :  { %220 = vst [vmem:[#allocation7] sm:$0xff] %v218_v2 }
  0x45   :  { %240 = dma.vmem_to_hbm [thread:$0]  %s236_s1, 128, %s238_s23, [#allocation4]  }
  0x46   :  { %354 = dma.done.wait [#allocation4], 128  }
  0x47   :  { %355 = vsyncadd [#allocation4], 4294967168 }
  0x48   :  { %245 = vsyncpa [#allocation3], 1 }
  0x49   :  { %246 = vsyncpa [#allocation6], 1 }
  0x4a   :  { %247 = vsyncpa [#allocation4], 1 }

</bundles_post_ra>
